<compile_context>
chip_gen: v7x
topology: tpu7x:2x2x1
jax: 0.10.0
libtpu: 0.0.40
codegen_flags: <defaults>
</compile_context>

<pallas_src>
import functools

import jax
import jax.numpy as jnp
from jax.experimental import pallas as pl
from jax.experimental.pallas import tpu as pltpu


# --------------------------------------------------------------------------- #
# Kernel
# --------------------------------------------------------------------------- #
def transition_kernel(x_ref, scale_ref, shift_ref, w_ref, o_ref):
    """One (batch, row-pair-block) grid step.

    x_ref     : (1, 2R, Wp, 2*Cin_pad)  streamed activations (f32 or bf16)
    scale_ref : (1, 2*Cin_pad)          folded BN scale (f32)
    shift_ref : (1, 2*Cin_pad)          folded BN shift (f32)
    w_ref     : (Cin_pad, Cout_pad)     1x1 conv weight with the pool 1/4 folded
    o_ref     : (1, R, Wp, Cout_pad)    f32 output block
    """
    x = x_ref[0].astype(jnp.float32)                      # (2R, Wp, 2C)
    # Folded BatchNorm + ReLU (scale/shift duplicated for both w-phases).
    y = jnp.maximum(x * scale_ref[0] + shift_ref[0], 0.0)

    cin = w_ref.shape[0]
    cout = w_ref.shape[1]
    two_r, wp, _ = y.shape
    r = two_r // 2

    # 2x2 average pool as plain adds (the 1/4 lives in the conv weight):
    #   w-pair: add the two lane halves (even / odd w-phase channels)
    yw = y[:, :, :cin] + y[:, :, cin:]                    # (2R, Wp, Cin_pad)
    #   h-pair: pair-sum along the leading (major) dim -- free relabel + VPU add
    yh = yw.reshape(r, 2, wp, cin).sum(axis=1)            # (R, Wp, Cin_pad)

    # 1x1 conv == one MXU matmul with M = R * Wp (Wp is 8-aligned -> free
    # reshape).  bf16 operands, f32 accumulation.
    m = yh.reshape(r * wp, cin).astype(w_ref.dtype)
    out = jnp.dot(m, w_ref[...], preferred_element_type=jnp.float32)
    o_ref[0] = out.reshape(r, wp, cout).astype(o_ref.dtype)


# --------------------------------------------------------------------------- #
# Tiling / padding heuristics
# --------------------------------------------------------------------------- #
def _round_up(x, m):
    return ((x + m - 1) // m) * m


def _pad_channels(c, overhead_num, overhead_den):
    """Pad to a multiple of 128 (lane-dense) only if the zero-pad overhead is
    <= overhead_num/overhead_den, otherwise to a multiple of 8."""
    c128 = _round_up(c, 128)
    if (c128 - c) * overhead_den <= c * overhead_num:
        return c128
    return _round_up(c, 8)


def _vmem_capacity_bytes():
    try:
        return int(pltpu.get_tpu_info().vmem_capacity_bytes)
    except Exception:            # pragma: no cover - conservative fallback
        return 64 << 20          # v7x per-TensorCore VMEM


def _pick_tiling(n, hp, wp, cin_pad, cout_pad, x_bytes, w_bytes, budget):
    """Pick R (h row-pairs per block) and the (possibly padded) Hp.

    Fits double-buffered x/out blocks plus the resident weight & scale/shift
    (also double-buffered by the default pipeline; pl.Buffered(1) could reclaim
    half of `const` but is left at the default for lowering safety) inside
    `budget`, prefers an even total grid-step count (two v7x TensorCores),
    large M = R*Wp (amortizes ~0.35us/step and makes DMAs big), and minimal
    H zero-padding.
    """
    const = 2 * (cin_pad * cout_pad * w_bytes + 2 * (2 * cin_pad) * 4)
    best = None
    for r in range(1, min(hp, 1024) + 1):
        hp_pad = _round_up(hp, r)
        if (hp_pad - hp) * 8 > hp:               # <= 12.5% zero-padding along H
            continue
        steps = n * (hp_pad // r)
        x_blk = 2 * r * wp * 2 * cin_pad * x_bytes
        o_blk = r * wp * cout_pad * 4
        if 2 * (x_blk + o_blk) + const > budget:
            continue
        score = (
            steps >= 2,                          # keep both v7x cores busy
            steps == 1 or steps % 2 == 0,        # even split across 2 cores
            min(r * wp, 2048),                   # big blocks / big DMAs
            -(hp_pad - hp),                      # least padding
            -r,                                  # then smallest block / most steps
        )
        if best is None or score > best[0]:
            best = (score, r, hp_pad)
    if best is None:
        return 1, hp
    return best[1], best[2]


# --------------------------------------------------------------------------- #
# Wrapper
# --------------------------------------------------------------------------- #
def transition_forward(x_nchw, gamma, beta, conv_w, eps=1e-5,
                       stream_dtype=jnp.bfloat16, conv_dtype=jnp.bfloat16):
    """BatchNorm2d (training stats) -> ReLU -> 1x1 Conv (no bias) -> AvgPool2.

    x_nchw: (N, Cin, H, W); gamma/beta: (Cin,); conv_w: (Cout, Cin, 1, 1).
    stream_dtype: HBM dtype of the packed activations (bf16 = half the traffic;
      pass jnp.float32 for a bit-accurate path).
    conv_dtype: MXU operand dtype (accumulation is always f32).
    """
    N, Cin, H, W = x_nchw.shape
    Cout = conv_w.shape[0]
    assert H % 2 == 0 and W % 2 == 0
    Hp, Wp = H // 2, W // 2

    # Padding targets (traffic-aware lane alignment).
    Cin_pad = _pad_channels(Cin, 1, 2)     # x128 if overhead <= 50%, else x8
    Cout_pad = _pad_channels(Cout, 1, 4)   # x128 if overhead <= 25%, else x8
    Wp_pad = _round_up(Wp, 8)              # keeps in-kernel reshapes free

    # Generation-aware VMEM knobs.
    cap = _vmem_capacity_bytes()
    vmem_limit = (32 << 20) if cap <= (64 << 20) else (64 << 20)
    budget = min(int(cap * 0.30), vmem_limit - (8 << 20))

    x_bytes = jnp.dtype(stream_dtype).itemsize
    w_bytes = jnp.dtype(conv_dtype).itemsize
    R, Hp_pad = _pick_tiling(N, Hp, Wp_pad, Cin_pad, Cout_pad,
                             x_bytes, w_bytes, budget)

    # ---- Layout transform: one fused pad + transpose + cast XLA copy --------
    # packed[n, h, w//2, (w%2)*Cin_pad + c] = x[n, c, h, w]
    xp = jnp.pad(x_nchw.astype(jnp.float32),
                 ((0, 0), (0, Cin_pad - Cin),
                  (0, 2 * Hp_pad - H), (0, 2 * Wp_pad - W)))
    packed = jnp.transpose(xp, (0, 2, 3, 1)).reshape(
        N, 2 * Hp_pad, Wp_pad, 2 * Cin_pad).astype(stream_dtype)

    # ---- BatchNorm training statistics (centered variance, f32 accumulation)
    # Read from the packed tensor: same values the kernel normalizes, and in
    # bf16 mode this re-read is half the bytes of re-reading the f32 input.
    cnt = N * H * W
    ph0 = packed[:, :H, :Wp, :Cin].astype(jnp.float32)                 # even w
    ph1 = packed[:, :H, :Wp, Cin_pad:Cin_pad + Cin].astype(jnp.float32)  # odd w
    mean = (jnp.sum(ph0, axis=(0, 1, 2)) + jnp.sum(ph1, axis=(0, 1, 2))) / cnt
    var = (jnp.sum((ph0 - mean) ** 2, axis=(0, 1, 2)) +
           jnp.sum((ph1 - mean) ** 2, axis=(0, 1, 2))) / cnt   # biased (training)
    scale = gamma.astype(jnp.float32) / jnp.sqrt(var + eps)
    shift = beta.astype(jnp.float32) - mean * scale
    # Padded channels: scale = shift = 0 so their lanes stay exactly zero.
    scale = jnp.pad(scale, (0, Cin_pad - Cin))
    shift = jnp.pad(shift, (0, Cin_pad - Cin))
    scale2 = jnp.concatenate([scale, scale])[None, :]          # (1, 2*Cin_pad)
    shift2 = jnp.concatenate([shift, shift])[None, :]

    # ---- 1x1 conv weight: fold the 2x2-average 1/4, pad Cin/Cout, cast ------
    wt = conv_w.reshape(Cout, Cin).T.astype(jnp.float32) * 0.25
    wt = jnp.pad(wt, ((0, Cin_pad - Cin),
                      (0, Cout_pad - Cout))).astype(conv_dtype)

    grid = (N, Hp_pad // R)
    out_pad = pl.pallas_call(
        transition_kernel,
        out_shape=jax.ShapeDtypeStruct((N, Hp_pad, Wp_pad, Cout_pad),
                                       jnp.float32),
        grid_spec=pl.GridSpec(
            grid=grid,
            in_specs=[
                pl.BlockSpec((1, 2 * R, Wp_pad, 2 * Cin_pad),
                             lambda n, h: (n, h, 0, 0)),
                pl.BlockSpec((1, 2 * Cin_pad), lambda n, h: (0, 0)),
                pl.BlockSpec((1, 2 * Cin_pad), lambda n, h: (0, 0)),
                pl.BlockSpec((Cin_pad, Cout_pad), lambda n, h: (0, 0)),
            ],
            out_specs=pl.BlockSpec((1, R, Wp_pad, Cout_pad),
                                   lambda n, h: (n, h, 0, 0)),
        ),
        compiler_params=pltpu.CompilerParams(
            dimension_semantics=("parallel", "parallel"),
            vmem_limit_bytes=vmem_limit),
    )(packed, scale2, shift2, wt)

    # Drop padding and return NCHW (slice + transpose fuse in XLA).
    return jnp.transpose(out_pad[:, :Hp, :Wp, :Cout], (0, 3, 1, 2))


# --------------------------------------------------------------------------- #
# Pure-JAX reference (matches the PyTorch forward, training-mode BN)
# --------------------------------------------------------------------------- #
def transition_reference(x, gamma, beta, conv_w, eps=1e-5):
    N, Cin, H, W = x.shape
    Cout = conv_w.shape[0]
    mean = jnp.mean(x, axis=(0, 2, 3))
    var = jnp.var(x, axis=(0, 2, 3))
    y = (x - mean[None, :, None, None]) / jnp.sqrt(var + eps)[None, :, None, None]
    y = y * gamma[None, :, None, None] + beta[None, :, None, None]
    y = jnp.maximum(y, 0.0)
    z = jnp.einsum('nchw,oc->nohw', y, conv_w.reshape(Cout, Cin))
    z = z.reshape(N, Cout, H // 2, 2, W // 2, 2).mean(axis=(3, 5))
    return z


if __name__ == "__main__":
    key = jax.random.PRNGKey(0)
    k_x, k_g, k_b, k_w = jax.random.split(key, 4)

    N, Cin, Cout, H, W = 2, 8, 4, 16, 16
    x = jax.random.normal(k_x, (N, Cin, H, W), jnp.float32)
    gamma = jax.random.normal(k_g, (Cin,), jnp.float32) * 0.5 + 1.0
    beta = jax.random.normal(k_b, (Cin,), jnp.float32) * 0.1
    conv_w = jax.random.normal(k_w, (Cout, Cin, 1, 1), jnp.float32) * 0.2

    ref = transition_reference(x, gamma, beta, conv_w)

    # Strict f32 validation path.
    fwd_f32 = jax.jit(functools.partial(transition_forward,
                                        stream_dtype=jnp.float32,
                                        conv_dtype=jnp.float32))
    out = jax.block_until_ready(fwd_f32(x, gamma, beta, conv_w))
    assert out.shape == (N, Cout, H // 2, W // 2), out.shape
    assert jnp.allclose(out, ref, rtol=1e-4, atol=1e-4), \
        float(jnp.max(jnp.abs(out - ref)))

    # Default fast path (bf16 streaming + bf16 MXU operands, f32 accumulation).
    fwd_fast = jax.jit(transition_forward)
    out_fast = jax.block_until_ready(fwd_fast(x, gamma, beta, conv_w))
    assert out_fast.shape == (N, Cout, H // 2, W // 2), out_fast.shape
    assert jnp.allclose(out_fast, ref, rtol=5e-2, atol=1e-1), \
        float(jnp.max(jnp.abs(out_fast - ref)))

    print("KERNEL_OK")
</pallas_src>

<mosaic_0001>
module attributes {stable_mosaic.version = 11 : i64} {
  func.func @transition_kernel(%arg0: i32, %arg1: i32, %arg2: memref<1x16x8x16xf32, #tpu.memory_space<vmem>>, %arg3: memref<1x16xf32, #tpu.memory_space<vmem>>, %arg4: memref<1x16xf32, #tpu.memory_space<vmem>>, %arg5: memref<8x8xf32, #tpu.memory_space<vmem>>, %arg6: memref<1x8x8x8xf32, #tpu.memory_space<vmem>>) attributes {dimension_semantics = [#tpu.dimension_semantics<parallel>, #tpu.dimension_semantics<parallel>], iteration_bounds = array<i64: 2, 1>, scalar_prefetch = 0 : i64, scratch_operands = 0 : i64, tpu.core_type = #tpu.core_type<tc>, window_params = [{transform_indices = @transform_0, window_bounds = array<i64: 1, 16, 8, 16>}, {pipeline_mode = #tpu.pipeline_mode<synchronous>, transform_indices = @transform_1, window_bounds = array<i64: 1, 16>}, {pipeline_mode = #tpu.pipeline_mode<synchronous>, transform_indices = @transform_2, window_bounds = array<i64: 1, 16>}, {pipeline_mode = #tpu.pipeline_mode<synchronous>, transform_indices = @transform_3, window_bounds = array<i64: 8, 8>}, {transform_indices = @transform_4, window_bounds = array<i64: 1, 8, 8, 8>}]} {
    %c0 = arith.constant 0 : index
    %c0_0 = arith.constant 0 : index
    %c0_1 = arith.constant 0 : index
    %c0_2 = arith.constant 0 : index
    %0 = vector.load %arg2[%c0, %c0_0, %c0_1, %c0_2] : memref<1x16x8x16xf32, #tpu.memory_space<vmem>>, vector<1x16x8x16xf32>
    %1 = vector.shape_cast %0 : vector<1x16x8x16xf32> to vector<16x8x16xf32>
    %c0_3 = arith.constant 0 : index
    %c0_4 = arith.constant 0 : index
    %2 = vector.load %arg3[%c0_3, %c0_4] : memref<1x16xf32, #tpu.memory_space<vmem>>, vector<1x16xf32>
    %3 = vector.shape_cast %2 : vector<1x16xf32> to vector<16xf32>
    %4 = vector.shape_cast %3 : vector<16xf32> to vector<1x1x16xf32>
    %5 = vector.broadcast %4 : vector<1x1x16xf32> to vector<16x8x16xf32>
    %6 = arith.mulf %1, %5 : vector<16x8x16xf32>
    %c0_5 = arith.constant 0 : index
    %c0_6 = arith.constant 0 : index
    %7 = vector.load %arg4[%c0_5, %c0_6] : memref<1x16xf32, #tpu.memory_space<vmem>>, vector<1x16xf32>
    %8 = vector.shape_cast %7 : vector<1x16xf32> to vector<16xf32>
    %9 = vector.shape_cast %8 : vector<16xf32> to vector<1x1x16xf32>
    %10 = vector.broadcast %9 : vector<1x1x16xf32> to vector<16x8x16xf32>
    %11 = arith.addf %6, %10 : vector<16x8x16xf32>
    %cst = arith.constant 0.000000e+00 : f32
    %12 = vector.broadcast %cst : f32 to vector<16x8x16xf32>
    %13 = arith.maximumf %11, %12 : vector<16x8x16xf32>
    %14 = vector.extract_strided_slice %13 {offsets = [0, 0, 0], sizes = [16, 8, 8], strides = [1, 1, 1]} : vector<16x8x16xf32> to vector<16x8x8xf32>
    %15 = vector.extract_strided_slice %13 {offsets = [0, 0, 8], sizes = [16, 8, 8], strides = [1, 1, 1]} : vector<16x8x16xf32> to vector<16x8x8xf32>
    %16 = arith.addf %14, %15 : vector<16x8x8xf32>
    %17 = vector.shape_cast %16 : vector<16x8x8xf32> to vector<8x2x8x8xf32>
    %cst_7 = arith.constant dense<0.000000e+00> : vector<8x8x8xf32>
    %18 = vector.multi_reduction <add>, %17, %cst_7 [1] : vector<8x2x8x8xf32> to vector<8x8x8xf32>
    %19 = vector.shape_cast %18 : vector<8x8x8xf32> to vector<64x8xf32>
    %c0_8 = arith.constant 0 : index
    %c0_9 = arith.constant 0 : index
    %20 = vector.load %arg5[%c0_8, %c0_9] : memref<8x8xf32, #tpu.memory_space<vmem>>, vector<8x8xf32>
    %cst_10 = arith.constant dense<0.000000e+00> : vector<64x8xf32>
    %21 = tpu.matmul %19, %20, %cst_10 {dimension_numbers = #tpu.dot_dimension_numbers<[1], [0], [0], [1], [0, 0, 1, 1], [], []>} : vector<64x8xf32>, vector<8x8xf32>, vector<64x8xf32> -> vector<64x8xf32>
    %22 = vector.shape_cast %21 : vector<64x8xf32> to vector<8x8x8xf32>
    %c0_11 = arith.constant 0 : index
    %c0_12 = arith.constant 0 : index
    %c0_13 = arith.constant 0 : index
    %c0_14 = arith.constant 0 : index
    %23 = vector.load %arg6[%c0_11, %c0_12, %c0_13, %c0_14] : memref<1x8x8x8xf32, #tpu.memory_space<vmem>>, vector<1x8x8x8xf32>
    %24 = vector.shape_cast %23 : vector<1x8x8x8xf32> to vector<8x8x8xf32>
    %25 = vector.shape_cast %22 : vector<8x8x8xf32> to vector<1x8x8x8xf32>
    tpu.vector_store %arg6[%c0_11, %c0_12, %c0_13, %c0_14], %25 {strides = array<i32>} : memref<1x8x8x8xf32, #tpu.memory_space<vmem>>, vector<1x8x8x8xf32>,
    return
  }
  func.func @transform_0(%arg0: i32, %arg1: i32) -> (i32, i32, i32, i32) {
    %c0_i32 = arith.constant 0 : i32
    %c0_i32_0 = arith.constant 0 : i32
    %c0_i32_1 = arith.constant 0 : i32
    return %arg0, %arg1, %c0_i32, %c0_i32_0 : i32, i32, i32, i32
  }
  func.func @transform_1(%arg0: i32, %arg1: i32) -> (i32, i32) {
    %c0_i32 = arith.constant 0 : i32
    %c0_i32_0 = arith.constant 0 : i32
    %c0_i32_1 = arith.constant 0 : i32
    return %c0_i32, %c0_i32_0 : i32, i32
  }
  func.func @transform_2(%arg0: i32, %arg1: i32) -> (i32, i32) {
    %c0_i32 = arith.constant 0 : i32
    %c0_i32_0 = arith.constant 0 : i32
    %c0_i32_1 = arith.constant 0 : i32
    return %c0_i32, %c0_i32_0 : i32, i32
  }
  func.func @transform_3(%arg0: i32, %arg1: i32) -> (i32, i32) {
    %c0_i32 = arith.constant 0 : i32
    %c0_i32_0 = arith.constant 0 : i32
    %c0_i32_1 = arith.constant 0 : i32
    return %c0_i32, %c0_i32_0 : i32, i32
  }
  func.func @transform_4(%arg0: i32, %arg1: i32) -> (i32, i32, i32, i32) {
    %c0_i32 = arith.constant 0 : i32
    %c0_i32_0 = arith.constant 0 : i32
    %c0_i32_1 = arith.constant 0 : i32
    return %arg0, %arg1, %c0_i32, %c0_i32_0 : i32, i32, i32, i32
  }
}

</mosaic_0001>

<bundles_post_ra>
// kernel: transition_forward.1
= control target key start
LH: loop header
LB: loop body
LE: loop exit
PB: predicated region body
PF: predicated region fallthrough
CT: control target
= control target key end

     0   :  { %s768_s15 = smov 0   ;;  %s770_s16 = smov 0   ;;  %s996_s0 = inlined_call_operand.vmem [shape: f32[2,16,8,16], index: 0, kind: input, shape index: {}]   ;;  %s997_s1 = inlined_call_operand.vmem [shape: f32[1,16], index: 1, kind: input, shape index: {}]   ;;  %s998_s2 = inlined_call_operand.vmem [shape: f32[1,16], index: 2, kind: input, shape index: {}]   ;;  %s999_s3 = inlined_call_operand.vmem [shape: f32[8,8], index: 3, kind: input, shape index: {}]   ;;  %s1000_s4 = inlined_call_operand.vmem [shape: f32[2,8,8,8], index: 4, kind: output, shape index: {}]  }
   0x1   :  { %s772_s17 = smov 0  }
   0x2 LB: > { %s26_s18 = sadd.s32 1, %s736_s16  ;;  %p649_p0 = scmp.ge.s32.totalorder %s740_s17, 1  ;;  %s740_s17 = sphi %s772_s17, %s14_s17   ;;  %s736_s16 = sphi %s770_s16, %s1002_s16   ;;  %s732_s15 = sphi %s768_s15, %s1001_s15  }
   0x3   : > { %p28_p1 = scmp.ge.s32.totalorder %s26_s18, 2  ;;  %p183_p2 = scmp.lt.s32.totalorder %s740_s17, 3 }
   0x5   : > { %s1004_s18 = smov (%p28_p1, %s26_s18), 0  ;;  %p184_p3 = pnand %p649_p0, %p183_p2 }
   0x6   : > { %p218_p4 = scmp.lt.s32.totalorder (!%p184_p3), %s732_s15, 1  ;;  %v792_v0 = vld [vmem:[%s997_s1] ss:$0 sm:$0xff] (!%p184_p3)  ;;  %s742_s29 = smov (!%p184_p3), 120   ;;  %vm395_vm0 = vcmask (!%p184_p3), 64512  }
   0x7   : > { %187 = sbr.rel (%p184_p3) target bundleno = 387 (0x183), region = 36  ;;  %v802_v1 = vld [vmem:[%s998_s2] ss:$0 sm:$0xff] (!%p184_p3) }
   0x8   : > { %v420_v22 = vld [vmem:[%s999_s3] sm:$0xff] (!%p184_p3) }
   0x9   : > { %677 = vmatprep.subr.mxu0 (!%p184_p3), %v420_v22  ;;  %691 = vmatprep.subr.mxu1 (!%p184_p3), %v420_v22 }
   0xa   : > { %678 = vmatpush3.msra.mxu0 (!%p184_p3), %v420_v22  ;;  %692 = vmatpush3.msra.mxu1 (!%p184_p3), %v420_v22 }
   0xe   : > { %s1006_s15 = smov (!%p218_p4, %s732_s15), 1 }
   0xf   : > { %s666_s19 = sshll.u32 %s1006_s15, 7  ;;  %s667_s30 = sshll.u32 %s1006_s15, 6 }
  0x10   : > { %s797_s24 = scalar_lea.vmem %s996_s0, %s666_s19  ;;  %s235_s7 = scalar_lea.vmem %s1000_s4, %s667_s30 }
  0x11   : > { %v245_v2 = vld [vmem:[%s797_s24 + $0x40] sm:$0xff]  ;;  %v246_v4 = vld [vmem:[%s797_s24 + $0x48] sm:$0xff]  ;;  %v240_v9 = vld [vmem:[%s797_s24 + $0x18] sm:$0xff] }
  0x12   : > { %v237_v3 = vld [vmem:[%s797_s24] sm:$0xff]  ;;  %v268_v5 = vmul.f32 %v792_v0, %v245_v2  ;;  %v269_v7 = vmul.f32 %v792_v0, %v246_v4  ;;  %v238_v8 = vld [vmem:[%s797_s24 + $0x8] sm:$0xff]  ;;  %v239_v10 = vld [vmem:[%s797_s24 + $0x10] sm:$0xff]  ;;  %v263_v12 = vmul.f32 %v792_v0, %v240_v9 }
  0x13   : > { %v260_v6 = vmul.f32 %v792_v0, %v237_v3  ;;  %v261_v11 = vmul.f32 %v792_v0, %v238_v8  ;;  %v262_v16 = vmul.f32 %v792_v0, %v239_v10  ;;  %v248_v17 = vld [vmem:[%s797_s24 + $0x58] sm:$0xff]  ;;  %v247_v19 = vld [vmem:[%s797_s24 + $0x50] sm:$0xff]  ;;  %v242_v29 = vld [vmem:[%s797_s24 + $0x28] sm:$0xff] }
  0x14   : > { %v816_v13 = vadd.f32 %v802_v1, %v268_v5  ;;  %v822_v15 = vadd.f32 %v802_v1, %v269_v7  ;;  %v836_v23 = vadd.f32 %v802_v1, %v263_v12  ;;  %v271_v24 = vmul.f32 %v792_v0, %v248_v17  ;;  %v241_v30 = vld [vmem:[%s797_s24 + $0x20] sm:$0xff]  ;;  %v250_v37 = vld [vmem:[%s797_s24 + $0x68] sm:$0xff]  ;;  %v244_v45 = vld [vmem:[%s797_s24 + $0x38] sm:$0xff] }
  0x15   : > { %v819_v14 = vadd.f32 %v802_v1, %v260_v6  ;;  %v827_v18 = vadd.f32 %v802_v1, %v261_v11  ;;  %v848_v27 = vadd.f32 %v802_v1, %v262_v16  ;;  %v270_v28 = vmul.f32 %v792_v0, %v247_v19  ;;  %v249_v38 = vld [vmem:[%s797_s24 + $0x60] sm:$0xff]  ;;  %v243_v46 = vld [vmem:[%s797_s24 + $0x30] sm:$0xff]  ;;  %v252_v53 = vld [vmem:[%s797_s24 + $0x78] sm:$0xff] }
  0x16   : > { %v307_v20 = vmax.f32 %v816_v13, 0.0  ;;  %v308_v25 = vmax.f32 %v822_v15, 0.0  ;;  %v302_v31 = vmax.f32 %v836_v23, 0.0  ;;  %v855_v32 = vadd.f32 %v802_v1, %v271_v24  ;;  %v251_v54 = vld [vmem:[%s797_s24 + $0x70] sm:$0xff] }
  0x17   : > { %v299_v21 = vmax.f32 %v819_v14, 0.0  ;;  %v300_v26 = vmax.f32 %v827_v18, 0.0  ;;  %v301_v33 = vmax.f32 %v848_v27, 0.0  ;;  %v865_v34 = vadd.f32 %v802_v1, %v270_v28 }
  0x18   : > { %347 = vrot.lane.b32.xlu1 %v307_v20, %s742_s29  ;;  %v265_v35 = vmul.f32 %v792_v0, %v242_v29  ;;  %v264_v36 = vmul.f32 %v792_v0, %v241_v30  ;;  %v310_v39 = vmax.f32 %v855_v32, 0.0  ;;  %v273_v40 = vmul.f32 %v792_v0, %v250_v37 }
  0x19   : > { %331 = vrot.lane.b32.xlu0 %v299_v21, %s742_s29  ;;  %v309_v41 = vmax.f32 %v865_v34, 0.0  ;;  %v272_v44 = vmul.f32 %v792_v0, %v249_v38  ;;  %v267_v47 = vmul.f32 %v792_v0, %v244_v45  ;;  %v266_v48 = vmul.f32 %v792_v0, %v243_v46 }
  0x1a   : > { %v881_v42 = vadd.f32 %v802_v1, %v265_v35  ;;  %v884_v43 = vadd.f32 %v802_v1, %v264_v36  ;;  %v900_v51 = vadd.f32 %v802_v1, %v273_v40  ;;  %v275_v56 = vmul.f32 %v792_v0, %v252_v53 }
  0x1b   : > { %v903_v52 = vadd.f32 %v802_v1, %v272_v44  ;;  %v908_v55 = vadd.f32 %v802_v1, %v267_v47  ;;  %v916_v59 = vadd.f32 %v802_v1, %v266_v48  ;;  %v274_v60 = vmul.f32 %v792_v0, %v251_v54 }
  0x1c   : > { %349 = vrot.lane.b32.xlu1 %v308_v25, %s742_s29  ;;  %v304_v49 = vmax.f32 %v881_v42, 0.0  ;;  %v303_v50 = vmax.f32 %v884_v43, 0.0  ;;  %v312_v57 = vmax.f32 %v900_v51, 0.0  ;;  %v924_v63 = vadd.f32 %v802_v1, %v275_v56 }
  0x1d   : > { %333 = vrot.lane.b32.xlu0 %v300_v26, %s742_s29  ;;  %v311_v58 = vmax.f32 %v903_v52, 0.0  ;;  %v306_v61 = vmax.f32 %v908_v55, 0.0  ;;  %v305_v62 = vmax.f32 %v916_v59, 0.0  ;;  %v927_v2 = vadd.f32 %v802_v1, %v274_v60 }
  0x1e   : > { %v314_v0 = vmax.f32 %v924_v63, 0.0 }
  0x1f   : > { %v313_v3 = vmax.f32 %v927_v2, 0.0 }
  0x20   : > { %337 = vrot.lane.b32.xlu1 %v302_v31, %s742_s29 }
  0x21   : > { %335 = vrot.lane.b32.xlu0 %v301_v33, %s742_s29 }
  0x24   : > { %353 = vrot.lane.b32.xlu1 %v310_v39, %s742_s29 }
  0x25   : > { %351 = vrot.lane.b32.xlu0 %v309_v41, %s742_s29 }
  0x28   : > { %341 = vrot.lane.b32.xlu1 %v304_v49, %s742_s29 }
  0x29   : > { %339 = vrot.lane.b32.xlu0 %v303_v50, %s742_s29 }
  0x2c   : > { %357 = vrot.lane.b32.xlu1 %v312_v57, %s742_s29 }
  0x2d   : > { %355 = vrot.lane.b32.xlu0 %v311_v58, %s742_s29 }
  0x30   : > { %345 = vrot.lane.b32.xlu1 %v306_v61, %s742_s29 }
  0x31   : > { %343 = vrot.lane.b32.xlu0 %v305_v62, %s742_s29 }
  0x34   : > { %361 = vrot.lane.b32.xlu1 %v314_v0, %s742_s29 }
  0x35   : > { %359 = vrot.lane.b32.xlu0 %v313_v3, %s742_s29 }
  0x8a   : > { %v348_v4 = vpop.permute.xlu1 %347 }
  0x8b   : > { %v332_v5 = vpop.permute.xlu0 %331  ;;  %v387_v6 = vadd.f32 %v348_v4, %v307_v20 }
  0x8c   : > { %v379_v1 = vadd.f32 %v332_v5, %v299_v21 }
  0x8d   : > { %v408_v16 = vsel %vm395_vm0, %v387_v6, 0.0 }
  0x8e   : > { %v350_v7 = vpop.permute.xlu1 %349  ;;  %v396_v11 = vsel %vm395_vm0, %v379_v1, 0.0 }
  0x8f   : > { %v334_v8 = vpop.permute.xlu0 %333  ;;  %v388_v9 = vadd.f32 %v350_v7, %v308_v25 }
  0x90   : > { %v380_v10 = vadd.f32 %v334_v8, %v300_v26 }
  0x91   : > { %v409_v13 = vsel %vm395_vm0, %v388_v9, 0.0 }
  0x92   : > { %v397_v12 = vsel %vm395_vm0, %v380_v10, 0.0  ;;  %v338_v17 = vpop.permute.xlu1 %337  ;;  %v410_v20 = vadd.f32 %v409_v13, %v408_v16 }
  0x93   : > { %v336_v14 = vpop.permute.xlu0 %335  ;;  %v398_v19 = vadd.f32 %v397_v12, %v396_v11  ;;  %v382_v21 = vadd.f32 %v338_v17, %v302_v31 }
  0x94   : > { %v381_v15 = vadd.f32 %v336_v14, %v301_v33  ;;  %685 = vmatprep.mubr.msk.f32.mxu1 %vm395_vm0, %v410_v20 }
  0x95   : > { %679 = vmatprep.mubr.msk.f32.mxu0 %vm395_vm0, %v398_v19  ;;  %v400_v18 = vsel %vm395_vm0, %v382_v21, 0.0 }
  0x96   : > { %v399_v22 = vsel %vm395_vm0, %v381_v15, 0.0  ;;  %v354_v25 = vpop.permute.xlu1 %353 }
  0x97   : > { %v401_v24 = vadd.f32 %v400_v18, %v399_v22  ;;  %v352_v26 = vpop.permute.xlu0 %351  ;;  %v390_v28 = vadd.f32 %v354_v25, %v310_v39 }
  0x98   : > { %v389_v23 = vadd.f32 %v352_v26, %v309_v41 }
  0x99   : > { %680 = vmatmul.mubr.msk.f32.vlgmr.msra.gmra.mrb[0].mxu0 %vm395_vm0, %v401_v24  ;;  %v412_v27 = vsel %vm395_vm0, %v390_v28, 0.0 }
  0x9a   : > { %v411_v29 = vsel %vm395_vm0, %v389_v23, 0.0  ;;  %v342_v31 = vpop.permute.xlu1 %341 }
  0x9b   : > { %v413_v30 = vadd.f32 %v412_v27, %v411_v29  ;;  %v340_v33 = vpop.permute.xlu0 %339  ;;  %v384_v35 = vadd.f32 %v342_v31, %v304_v49 }
  0x9c   : > { %v383_v36 = vadd.f32 %v340_v33, %v303_v50 }
  0x9d   : > { %686 = vmatmul.mubr.msk.f32.vlgmr.msra.gmra.mrb[0].mxu1 %vm395_vm0, %v413_v30  ;;  %v403_v37 = vsel %vm395_vm0, %v384_v35, 0.0 }
  0x9e   : > { %v402_v32 = vsel %vm395_vm0, %v383_v36, 0.0  ;;  %v358_v34 = vpop.permute.xlu1 %357 }
  0x9f   : > { %v404_v38 = vadd.f32 %v403_v37, %v402_v32  ;;  %v356_v39 = vpop.permute.xlu0 %355  ;;  %v392_v40 = vadd.f32 %v358_v34, %v312_v57 }
  0xa0   : > { %v391_v41 = vadd.f32 %v356_v39, %v311_v58 }
  0xa1   : > { %682 = vmatprep.mubr.msk.f32.mxu0 %vm395_vm0, %v404_v38  ;;  %v415_v42 = vsel %vm395_vm0, %v392_v40, 0.0 }
  0xa2   : > { %v414_v43 = vsel %vm395_vm0, %v391_v41, 0.0  ;;  %v346_v45 = vpop.permute.xlu1 %345 }
  0xa3   : > { %v416_v44 = vadd.f32 %v415_v42, %v414_v43  ;;  %v344_v46 = vpop.permute.xlu0 %343  ;;  %v386_v47 = vadd.f32 %v346_v45, %v306_v61 }
  0xa4   : > { %v385_v48 = vadd.f32 %v344_v46, %v305_v62 }
  0xa5   : > { %688 = vmatprep.mubr.msk.f32.mxu1 %vm395_vm0, %v416_v44  ;;  %v406_v49 = vsel %vm395_vm0, %v386_v47, 0.0 }
  0xa6   : > { %v405_v50 = vsel %vm395_vm0, %v385_v48, 0.0  ;;  %v362_v52 = vpop.permute.xlu1 %361 }
  0xa7   : > { %v407_v51 = vadd.f32 %v406_v49, %v405_v50  ;;  %v360_v53 = vpop.permute.xlu0 %359  ;;  %v394_v54 = vadd.f32 %v362_v52, %v314_v0 }
  0xa8   : > { %v393_v55 = vadd.f32 %v360_v53, %v313_v3 }
  0xa9   : > { %683 = vmatmul.mubr.msk.f32.gmra.mrb[2].mxu0 %vm395_vm0, %v407_v51  ;;  %v418_v56 = vsel %vm395_vm0, %v394_v54, 0.0 }
  0xaa   : > { %v417_v57 = vsel %vm395_vm0, %v393_v55, 0.0 }
  0xab   : > { %v419_v58 = vadd.f32 %v418_v56, %v417_v57 }
  0xad   : > { %689 = vmatmul.mubr.msk.f32.gmra.mrb[2].mxu1 %vm395_vm0, %v419_v58 }
 0x16c   : > { %v681_v59 = vpop.f32.mrb[0].mxu0 }
 0x16d   : > { %551 = vst.msk [vmem:[%s235_s7 + $0x8] sm:$0xff] %vm395_vm0, %v681_v59  ;;  %v511_v60 = vpop.f32.mrb[1].mxu0 }
 0x16e   : > { %550 = vst.msk [vmem:[%s235_s7] sm:$0xff] %vm395_vm0, %v511_v60 }
 0x170   : > { %v687_v61 = vpop.f32.mrb[0].mxu1 }
 0x171   : > { %555 = vst.msk [vmem:[%s235_s7 + $0x28] sm:$0xff] %vm395_vm0, %v687_v61  ;;  %v531_v62 = vpop.f32.mrb[1].mxu1 }
 0x172   : > { %554 = vst.msk [vmem:[%s235_s7 + $0x20] sm:$0xff] %vm395_vm0, %v531_v62 }
 0x17c   : > { %v684_v63 = vpop.f32.mrb[2].mxu0 }
 0x17d   : > { %553 = vst.msk [vmem:[%s235_s7 + $0x18] sm:$0xff] %vm395_vm0, %v684_v63  ;;  %v521_v2 = vpop.f32.mrb[3].mxu0 }
 0x17e   : > { %552 = vst.msk [vmem:[%s235_s7 + $0x10] sm:$0xff] %vm395_vm0, %v521_v2 }
 0x180   : > { %v690_v0 = vpop.f32.mrb[2].mxu1 }
 0x181   : > { %557 = vst.msk [vmem:[%s235_s7 + $0x38] sm:$0xff] %vm395_vm0, %v690_v0  ;;  %v541_v3 = vpop.f32.mrb[3].mxu1 }
 0x182   : > { %556 = vst.msk [vmem:[%s235_s7 + $0x30] sm:$0xff] %vm395_vm0, %v541_v3 }
 0x183 PF: > { %s14_s17 = sadd.s32 1, %s740_s17   ;;  %s1001_s15 = smov %s736_s16 }
 0x184   : > { %p11_p5 = scmp.ge.s32.totalorder %s14_s17, 4   ;;  %s1002_s16 = smov %s1004_s18 }
 0x186   :  { %13 = sbr.rel (!%p11_p5) target bundleno = 2 (0x2), region = 66 }

</bundles_post_ra>
